<compile_context>
chip_gen: v5e
topology: v5e:2x2
jax: 0.10.0
libtpu: 0.0.40
codegen_flags: <defaults>
</compile_context>

<pallas_src>
import math

import jax
import jax.numpy as jnp
from jax.experimental import pallas as pl
from jax.experimental.pallas import tpu as pltpu


def _round_up(a, b):
    return ((a + b - 1) // b) * b


def _cdp_infer_kernel(x_ref, w_ref, out_ref):
    """One grid step: a (tn, D) tile of x accumulates into the (T, tn) sums."""
    @pl.when(pl.program_id(0) == 0)
    def _():
        out_ref[...] = jnp.zeros_like(out_ref)

    x = x_ref[...]                                         # (tn, D)  f32
    z = jnp.concatenate([x * x, x], axis=-1)               # (tn, 2D)
    # (T, 2D) contracted with (tn, 2D) on the 2D axis -> (T, tn); rows of x
    # land on the lane axis (dense), T on sublanes.
    out_ref[...] += jax.lax.dot_general(
        w_ref[...], z,
        dimension_numbers=(((1,), (1,)), ((), ())),
        preferred_element_type=jnp.float32)


def cdp_mil_infer(x, mu, rho, log_pi, *, tn=512):
    """x: (1, N, D); mu, rho: (T, D); log_pi: (N, T).  Returns logits (1, T)."""
    x = jnp.squeeze(x, axis=0).astype(jnp.float32)          # (N, D)
    n, d = x.shape
    t = mu.shape[0]

    # ---- parameter preprocessing (glue, plain JAX, outside the hot loop) ----
    mu_f = mu.astype(jnp.float32)
    sigma = jax.nn.softplus(rho.astype(jnp.float32))        # (T, D) numerically safe
    inv_var = 1.0 / (sigma * sigma)                         # (T, D)
    w = jnp.concatenate([-0.5 * inv_var, mu_f * inv_var], axis=1)   # (T, 2D)
    const = (-0.5 * jnp.sum(mu_f * mu_f * inv_var, axis=1)
             - jnp.sum(jnp.log(sigma), axis=1)
             - d * math.log(math.sqrt(2.0 * math.pi)))      # (T,)
    log_pi_mean = jnp.mean(log_pi.astype(jnp.float32), axis=0)       # (T,)

    # ---- row tiling: big tiles, zero-pad the tail ----
    tn_eff = min(tn, _round_up(n, 8))
    n_pad = _round_up(n, tn_eff)
    if n_pad != n:
        x = jnp.pad(x, ((0, n_pad - n), (0, 0)))            # zero rows -> 0 contribution
    grid = (n_pad // tn_eff,)

    sums = pl.pallas_call(
        _cdp_infer_kernel,
        out_shape=jax.ShapeDtypeStruct((t, tn_eff), jnp.float32),
        grid_spec=pltpu.PrefetchScalarGridSpec(
            num_scalar_prefetch=0,
            grid=grid,
            in_specs=[
                pl.BlockSpec((tn_eff, d), lambda i: (i, 0)),     # x row tile
                pl.BlockSpec((t, 2 * d), lambda i: (0, 0)),      # fused params (stationary)
            ],
            out_specs=pl.BlockSpec((t, tn_eff), lambda i: (0, 0)),  # resident accumulator
        ),
        compiler_params=pltpu.CompilerParams(
            dimension_semantics=("arbitrary",)),
    )(x, w)                                                  # (T, tn_eff)

    # single cross-row reduce + hoisted constants, outside the kernel loop
    logits = jnp.sum(sums, axis=1) / jnp.float32(n) + const + log_pi_mean
    return logits[None, :]                                   # (1, T)


def _reference(x, mu, rho, log_pi):
    """Pure-JAX reference matching the PyTorch infer() semantics."""
    x = jnp.squeeze(x, axis=0)
    sigma = jax.nn.softplus(rho)                             # (T, D)
    diff = x[:, None, :] - mu[None, :, :]                    # (N, T, D)
    log_pdf = jnp.sum(
        -math.log(math.sqrt(2.0 * math.pi))
        - jnp.log(sigma)[None]
        - diff * diff / (2.0 * sigma * sigma)[None],
        axis=-1)                                             # (N, T)
    logits = jnp.mean(log_pi + log_pdf, axis=0)
    return logits[None, :]


if __name__ == "__main__":
    key = jax.random.PRNGKey(0)
    in_dim = 32          # feature dim D
    num_classes = 4      # truncation T (number of DP components)
    eta = 1.0
    n_inst = 16          # number of instances in the bag

    k_x, k_mu, k_rho, k_beta = jax.random.split(key, 4)

    # Deterministic parameter init mirroring uniform_(-0.5, 0.5) in __init__.
    mu = jax.random.uniform(k_mu, (num_classes, in_dim),
                            minval=-0.5, maxval=0.5, dtype=jnp.float32)
    rho = jax.random.uniform(k_rho, (num_classes, in_dim),
                             minval=-0.5, maxval=0.5, dtype=jnp.float32)

    x = jax.random.normal(k_x, (1, n_inst, in_dim), dtype=jnp.float32)

    # beta ~ Beta(gamma_1=1, gamma_2=eta), shape (N, T); stick-breaking -> pi.
    # (scipy beta.rvs in the original is replaced by jax.random.beta: glue,
    #  deterministic given PRNGKey.)
    beta_s = jax.random.beta(k_beta, 1.0, eta, (n_inst, num_classes),
                             dtype=jnp.float32)
    one_minus_cumprod = jnp.cumprod(1.0 - beta_s, axis=-1)
    pi = beta_s * jnp.concatenate(
        [jnp.ones((n_inst, 1), jnp.float32), one_minus_cumprod[:, :-1]], axis=1)
    log_pi = jnp.log(pi)                                     # (N, T)

    logits = cdp_mil_infer(x, mu, rho, log_pi)
    logits = jax.block_until_ready(logits)

    ref = _reference(x, mu, rho, log_pi)
    assert logits.shape == (1, num_classes)
    assert not bool(jnp.isnan(logits).any())
    assert bool(jnp.allclose(logits, ref, rtol=1e-4, atol=1e-4))

    print("KERNEL_OK")
</pallas_src>

<mosaic_0001>
module attributes {stable_mosaic.version = 11 : i64} {
  func.func @_cdp_infer_kernel(%arg0: i32, %arg1: memref<16x32xf32, #tpu.memory_space<vmem>>, %arg2: memref<4x64xf32, #tpu.memory_space<vmem>>, %arg3: memref<4x16xf32, #tpu.memory_space<vmem>>) attributes {dimension_semantics = [#tpu.dimension_semantics<arbitrary>], iteration_bounds = array<i64: 1>, scalar_prefetch = 0 : i64, scratch_operands = 0 : i64, tpu.core_type = #tpu.core_type<tc>, window_params = [{transform_indices = @transform_0, window_bounds = array<i64: 16, 32>}, {pipeline_mode = #tpu.pipeline_mode<synchronous>, transform_indices = @transform_1, window_bounds = array<i64: 4, 64>}, {pipeline_mode = #tpu.pipeline_mode<synchronous>, transform_indices = @transform_2, window_bounds = array<i64: 4, 16>}]} {
    %c0_i32 = arith.constant 0 : i32
    %0 = arith.cmpi eq, %arg0, %c0_i32 : i32
    %1 = arith.extui %0 : i1 to i32
    %c0_i32_0 = arith.constant 0 : i32
    %2 = arith.cmpi ne, %1, %c0_i32_0 : i32
    scf.if %2 {
      %cst_8 = arith.constant 0.000000e+00 : f32
      %11 = vector.broadcast %cst_8 : f32 to vector<4x16xf32>
      %c0_9 = arith.constant 0 : index
      %c0_10 = arith.constant 0 : index
      %12 = vector.load %arg3[%c0_9, %c0_10] : memref<4x16xf32, #tpu.memory_space<vmem>>, vector<4x16xf32>
      tpu.vector_store %arg3[%c0_9, %c0_10], %11 {strides = array<i32>} : memref<4x16xf32, #tpu.memory_space<vmem>>, vector<4x16xf32>,
    } else {
    }
    %c0 = arith.constant 0 : index
    %c0_1 = arith.constant 0 : index
    %3 = vector.load %arg1[%c0, %c0_1] : memref<16x32xf32, #tpu.memory_space<vmem>>, vector<16x32xf32>
    %4 = arith.mulf %3, %3 : vector<16x32xf32>
    %5 = tpu.concatenate %4, %3 in 1 : vector<16x32xf32>, vector<16x32xf32> -> vector<16x64xf32>
    %c0_2 = arith.constant 0 : index
    %c0_3 = arith.constant 0 : index
    %6 = vector.load %arg3[%c0_2, %c0_3] : memref<4x16xf32, #tpu.memory_space<vmem>>, vector<4x16xf32>
    %c0_4 = arith.constant 0 : index
    %c0_5 = arith.constant 0 : index
    %7 = vector.load %arg2[%c0_4, %c0_5] : memref<4x64xf32, #tpu.memory_space<vmem>>, vector<4x64xf32>
    %cst = arith.constant dense<0.000000e+00> : vector<4x16xf32>
    %8 = tpu.matmul %7, %5, %cst {dimension_numbers = #tpu.dot_dimension_numbers<[1], [1], [0], [0], [0, 0, 1, 0], [], []>} : vector<4x64xf32>, vector<16x64xf32>, vector<4x16xf32> -> vector<4x16xf32>
    %9 = arith.addf %6, %8 : vector<4x16xf32>
    %c0_6 = arith.constant 0 : index
    %c0_7 = arith.constant 0 : index
    %10 = vector.load %arg3[%c0_6, %c0_7] : memref<4x16xf32, #tpu.memory_space<vmem>>, vector<4x16xf32>
    tpu.vector_store %arg3[%c0_6, %c0_7], %9 {strides = array<i32>} : memref<4x16xf32, #tpu.memory_space<vmem>>, vector<4x16xf32>,
    return
  }
  func.func @transform_0(%arg0: i32) -> (i32, i32) {
    %c0_i32 = arith.constant 0 : i32
    %c0_i32_0 = arith.constant 0 : i32
    return %arg0, %c0_i32 : i32, i32
  }
  func.func @transform_1(%arg0: i32) -> (i32, i32) {
    %c0_i32 = arith.constant 0 : i32
    %c0_i32_0 = arith.constant 0 : i32
    %c0_i32_1 = arith.constant 0 : i32
    return %c0_i32, %c0_i32_0 : i32, i32
  }
  func.func @transform_2(%arg0: i32) -> (i32, i32) {
    %c0_i32 = arith.constant 0 : i32
    %c0_i32_0 = arith.constant 0 : i32
    %c0_i32_1 = arith.constant 0 : i32
    return %c0_i32, %c0_i32_0 : i32, i32
  }
}

</mosaic_0001>

<bundles_post_ra>
// kernel: tpu_custom_call.1
= control target key start
LH: loop header
LB: loop body
LE: loop exit
PB: predicated region body
PF: predicated region fallthrough
CT: control target
= control target key end

     0   :  { %7 = vsyncpa [#allocation3], 0  ;;  %s237_s0 = inlined_call_operand.hbm [shape: f32[16,32], index: 0, kind: input, shape index: {}]   ;;  %s238_s1 = inlined_call_operand.hbm [shape: f32[4,64], index: 1, kind: input, shape index: {}]   ;;  %s239_s2 = inlined_call_operand.hbm [shape: f32[4,16], index: 2, kind: output, shape index: {}]  }
   0x1   :  { %8 = vsyncpa [#allocation6], 0 }
   0x2   :  { %9 = vsyncpa [#allocation4], 0  ;;  %s14_s11 = sshll.u32 %s237_s0, 4  ;;  %s204_s12 = smov [#allocation2]   ;;  %s15_s11 = int_to_ptr.hbm [resolvable:$true] %s14_s11 }
   0x3   :  { %s16_s13 = sshll.u32 %s204_s12, 4  ;;  %s28_s16 = sshll.u32 %s238_s1, 4  ;;  %s17_s13 = int_to_ptr.vmem [resolvable:$true] %s16_s13  ;;  %s29_s16 = int_to_ptr.hbm [resolvable:$true] %s28_s16 }
   0x4   :  { %s205_s17 = smov 128   ;;  %s206_s18 = smov 8  }
   0x5   :  { %22 = dma.hbm_to_vmem [thread:$0]  %s15_s11, 256, %s17_s13, [#allocation3], %s205_s17, %s205_s17, %s206_s18  }
   0x6   :  { %s207_s19 = smov [#allocation5]  }
   0x7   :  { %s30_s20 = sshll.u32 %s207_s19, 4  ;;  %s31_s20 = int_to_ptr.vmem [resolvable:$true] %s30_s20 }
   0x8   :  { %33 = dma.hbm_to_vmem [thread:$0]  %s29_s16, 64, %s31_s20, [#allocation6]  }
   0x9   :  { %198 = dma.done.wait [#allocation3], 256  }
   0xa   :  { %199 = vsyncadd [#allocation3], 4294967040 }
   0xb   :  { %200 = dma.done.wait [#allocation6], 64  }
   0xc   :  { %201 = vsyncadd [#allocation6], 4294967232  ;;  %vm46_vm0 = vcmask 125952   ;;  %v208_v0 = vmov 0.0   ;;  %v49_v1 = vld [vmem:[#allocation2 + $0x8] sm:$0xff]  ;;  %s209_s0 = smov 32  }
   0xd   :  { %47 = vst.msk [vmem:[#allocation7] sm:$0xf] %vm46_vm0, %v208_v0  ;;  %56 = vrot.lane.b32.xlu0 %v49_v1, %s209_s0  ;;  %v48_v2 = vld [vmem:[#allocation2] sm:$0xff]  ;;  %v51_v3 = vmul.f32 %v49_v1, %v49_v1  ;;  %vm60_vm1 = vcmask 261120   ;;  %vm65_vm2 = vcmask 523264   ;;  %s210_s1 = smov [#allocation7]  }
   0xe   :  { %v50_v6 = vmul.f32 %v48_v2, %v48_v2  ;;  %v64_v9 = vld [vmem:[#allocation5] sm:$0xf]  ;;  %s103_s21 = sshll.u32 %s210_s1, 4  ;;  %s105_s24 = sshll.u32 %s239_s2, 4  ;;  %s104_s21 = int_to_ptr.vmem [resolvable:$true] %s103_s21  ;;  %s106_s24 = int_to_ptr.hbm [resolvable:$true] %s105_s24 }
  0x14   :  { %v63_v10 = vld [vmem:[#allocation7] sm:$0xf] }
  0x15   :  { %54 = vrot.lane.b32.xlu0 %v48_v2, %s209_s0 }
  0x7f   :  { %v57_v4 = vpop.permute.xlu0 %56 }
  0x80   :  { %v62_v5 = vsel %vm60_vm1, %v51_v3, %v57_v4 }
  0x81   :  { %116 = vmatpush.xpose.msk.msra.mxu0 %vm65_vm2, %v62_v5 }
  0x87   :  { %v55_v7 = vpop.permute.xlu0 %54 }
  0x88   :  { %v61_v8 = vsel %vm60_vm1, %v50_v6, %v55_v7 }
  0x89   :  { %117 = vmatpush.xpose.msk.msra.mxu0 %vm65_vm2, %v61_v8 }
  0x8c   :  { %118 = vmatmul.msk.f32.vlgmr.msra.gmra.mxu0 %vm65_vm2, %v64_v9 }
 0x109   :  { %v92_v11 = vpop.f32.mrf.mxu0 }
 0x10a   :  { %v95_v12 = vadd.f32 %v92_v11, %v63_v10 }
 0x10c   :  { %97 = vst.msk [vmem:[#allocation7] sm:$0xf] %vm46_vm0, %v95_v12 }
 0x10d   :  { %108 = dma.vmem_to_hbm [thread:$0]  %s104_s21, 64, %s106_s24, [#allocation4]  }
 0x10e   :  { %202 = dma.done.wait [#allocation4], 64  }
 0x10f   :  { %203 = vsyncadd [#allocation4], 4294967232 }
 0x110   :  { %113 = vsyncpa [#allocation3], 1 }
 0x111   :  { %114 = vsyncpa [#allocation6], 1 }
 0x112   :  { %115 = vsyncpa [#allocation4], 1 }

</bundles_post_ra>
